<compile_context>
chip_gen: v7x
topology: tpu7x:2x2x1
jax: 0.10.0
libtpu: 0.0.40
codegen_flags: <defaults>
</compile_context>

<pallas_src>
import jax
import jax.numpy as jnp
from jax.experimental import pallas as pl
from jax.experimental.pallas import tpu as pltpu


# ----------------------------------------------------------------------------
# Kernels
# ----------------------------------------------------------------------------
def _value_head_kernel(x_ref, w_ref, b_ref, o_ref):
    """Single-K-tile path. One grid step = TM flattened (batch*seq) rows.

    x_ref: (TM, H)  hidden-state rows (native activation dtype, streamed)
    w_ref: (H, 1)   value-head weight (resident across grid)
    b_ref: (1, 1)   value-head bias   (SMEM scalar)
    o_ref: (1, TM)  lane-dense output row for this tile
    """
    bias = b_ref[0, 0].astype(jnp.float32)
    tm = x_ref.shape[0]
    # Chunked epilogue: produce the lane-sparse (chunk, 1) column and transpose
    # it to a lane-dense (1, chunk) row 128 rows at a time so vreg pressure is
    # bounded and stores are full-lane vst.
    for off in range(0, tm, 128):
        sz = min(128, tm - off)
        col = jnp.dot(x_ref[off:off + sz, :], w_ref[...],
                      preferred_element_type=jnp.float32) + bias      # (sz, 1)
        o_ref[:, off:off + sz] = jnp.transpose(col).astype(o_ref.dtype)


def _value_head_kernel_ktiled(x_ref, w_ref, b_ref, o_ref, acc_ref):
    """K-tiled path for very wide hidden sizes.

    grid = (num_row_tiles, num_k_tiles); K axis is last and "arbitrary".
    x_ref: (TM, TK), w_ref: (TK, 1), b_ref: (1, 1) SMEM, o_ref: (1, TM),
    acc_ref: (TM, 1) f32 scratch (resident across the K loop).
    """
    k = pl.program_id(1)

    @pl.when(k == 0)
    def _():
        acc_ref[...] = jnp.zeros_like(acc_ref)

    acc_ref[...] += jnp.dot(x_ref[...], w_ref[...],
                            preferred_element_type=jnp.float32)

    @pl.when(k == pl.num_programs(1) - 1)
    def _():
        bias = b_ref[0, 0].astype(jnp.float32)
        tm = acc_ref.shape[0]
        for off in range(0, tm, 128):
            sz = min(128, tm - off)
            col = acc_ref[off:off + sz, :] + bias                     # (sz, 1)
            o_ref[:, off:off + sz] = jnp.transpose(col).astype(o_ref.dtype)


# ----------------------------------------------------------------------------
# Tiling / wrapper
# ----------------------------------------------------------------------------
def _round_up(x, m):
    return ((x + m - 1) // m) * m


def _vmem_capacity_bytes():
    """Generation-aware VMEM capacity (v7x: 64 MiB, v5e/v6e: 128 MiB)."""
    try:
        info = pltpu.get_tpu_info()
        v = getattr(info, "vmem_capacity_bytes", None)
        if v:
            return int(v)
    except Exception:
        pass
    return 64 << 20  # conservative default


def _choose_tiles(n_rows, hidden, itemsize, vmem_bytes):
    """Return (tm, tk). tk == hidden means no K-tiling."""
    per_buffer_budget = max(vmem_bytes // 4, 4 << 20)
    sub = {4: 8, 2: 16, 1: 32}.get(itemsize, 8)
    bytes_per_row = max(hidden * itemsize, 1)

    tm = (per_buffer_budget // bytes_per_row) // 128 * 128
    tm = min(tm, 2048)

    if tm >= 128:
        # Full-H rows fit in the budget: no K-tiling.
        if tm >= n_rows:
            if n_rows >= 256:
                # Split into 2 tiles so both v7x TensorCores get work.
                tm = _round_up(pl.cdiv(n_rows, 2), 128)
            else:
                tm = _round_up(max(n_rows, 1), sub)
        else:
            # Prefer an even tile count (v7x megacore balance).
            t = tm
            while t > 128 and pl.cdiv(n_rows, t) % 2 == 1:
                t -= 128
            if pl.cdiv(n_rows, t) % 2 == 0:
                tm = t
        return tm, hidden

    # Very wide hidden dim: tile the contraction axis too (tk must divide H so
    # the reduction never touches padded garbage).
    max_tk = min(hidden, max((per_buffer_budget // (128 * itemsize)) // 128 * 128, 0))
    tk = 0
    for cand in range(max_tk, 0, -128):
        if hidden % cand == 0:
            tk = cand
            break
    if tk == 0:
        # TODO(synk): hidden sizes with no 128-multiple divisor that also
        # exceed the per-buffer budget fall back to a minimal row tile.
        tm = max(sub, (per_buffer_budget // bytes_per_row) // sub * sub)
        return min(tm, _round_up(max(n_rows, 1), sub)), hidden

    tm = (per_buffer_budget // (tk * itemsize)) // 128 * 128
    tm = max(128, min(tm, 2048))
    return tm, tk


def value_head_forward(hidden_states, weight, bias, *, tile_m=None, tile_k=None):
    """hidden_states: (B, S, H); weight: (H, 1); bias: (1, 1).

    Returns (B, S) in weight.dtype — matches PretrainedModelValueHead.forward.
    """
    B, S, H = hidden_states.shape
    out_dtype = weight.dtype

    n_rows = B * S
    x2d = hidden_states.reshape(n_rows, H)

    # Bandwidth-bound: keep the big activation tensor in its native dtype and
    # cast the tiny (H, 1) weight instead; accumulate in f32 inside the kernel.
    w = weight if weight.dtype == x2d.dtype else weight.astype(x2d.dtype)
    b = jnp.reshape(bias, (1, 1)).astype(jnp.float32)

    itemsize = jnp.dtype(x2d.dtype).itemsize
    out_itemsize = jnp.dtype(out_dtype).itemsize

    vmem_bytes = _vmem_capacity_bytes()
    tm, tk = _choose_tiles(n_rows, H, itemsize, vmem_bytes)
    if tile_m is not None:
        tm = tile_m
    if tile_k is not None:
        tk = tile_k
    assert H % tk == 0, "contraction tile must divide the hidden size"

    num_row_tiles = pl.cdiv(n_rows, tm)
    # NOTE: no jnp.pad of the input.  Pallas handles the ragged last row-block;
    # the garbage rows in the padded output region are sliced off below.
    n_pad = num_row_tiles * tm

    k_tiled = (tk != H)
    num_k_tiles = H // tk

    # Generation-aware VMEM limit: requested buffers + slack, capped at 80% of
    # physical VMEM (v7x is only 64 MiB).
    in_buf = tm * tk * itemsize
    needed = (2 * (in_buf + tk * itemsize + tm * out_itemsize)
              + (tm * 4 if k_tiled else 0) + (8 << 20))
    vmem_limit = int(min(int(0.8 * vmem_bytes), max(needed, 32 << 20)))

    cost = pl.CostEstimate(
        flops=2 * n_rows * H,
        transcendentals=0,
        bytes_accessed=n_rows * H * itemsize + H * itemsize + n_pad * out_itemsize,
    )

    bias_spec = pl.BlockSpec(memory_space=pltpu.MemorySpace.SMEM)

    if not k_tiled:
        grid = (num_row_tiles,)
        in_specs = [
            pl.BlockSpec((tm, H), lambda i: (i, 0)),   # activations (streamed)
            pl.BlockSpec((H, 1), lambda i: (0, 0)),    # weight (resident)
            bias_spec,                                 # bias (SMEM scalar)
        ]
        out_specs = pl.BlockSpec((1, tm), lambda i: (0, i))
        scratch = []
        kernel = _value_head_kernel
        sem = ("parallel",)
    else:
        grid = (num_row_tiles, num_k_tiles)
        in_specs = [
            pl.BlockSpec((tm, tk), lambda i, k: (i, k)),
            pl.BlockSpec((tk, 1), lambda i, k: (k, 0)),
            bias_spec,
        ]
        out_specs = pl.BlockSpec((1, tm), lambda i, k: (0, i))
        scratch = [pltpu.VMEM((tm, 1), jnp.float32)]
        kernel = _value_head_kernel_ktiled
        sem = ("parallel", "arbitrary")

    out = pl.pallas_call(
        kernel,
        out_shape=jax.ShapeDtypeStruct((1, n_pad), out_dtype),
        grid_spec=pltpu.PrefetchScalarGridSpec(
            num_scalar_prefetch=0,
            grid=grid,
            in_specs=in_specs,
            out_specs=out_specs,
            scratch_shapes=scratch,
        ),
        compiler_params=pltpu.CompilerParams(
            dimension_semantics=sem,
            vmem_limit_bytes=vmem_limit,
        ),
        cost_estimate=cost,
    )(x2d, w, b)

    return out[0, :n_rows].reshape(B, S)


def init_value_head_params(key, hidden_size, dtype=jnp.float32):
    """nn.init.normal_(weight, std=1/sqrt(H+1)); bias = 0."""
    std = 1.0 / jnp.sqrt(jnp.asarray(hidden_size + 1, dtype=jnp.float32))
    # torch Linear weight is (out_features=1, in_features=H); stored here
    # transposed as (H, 1) so the kernel does x @ w directly (same math).
    w = jax.random.normal(key, (hidden_size, 1), dtype=dtype) * std
    b = jnp.zeros((1, 1), dtype=dtype)
    return w, b


if __name__ == "__main__":
    key = jax.random.PRNGKey(0)
    k1, k2, k3, k4 = jax.random.split(key, 4)

    # --- Test 1: small single-tile path (B=2, S=8, H=32) ---------------------
    B, S, H = 2, 8, 32
    hidden_states = jax.random.normal(k1, (B, S, H), dtype=jnp.float32)
    weight, bias = init_value_head_params(k2, H)
    value = jax.block_until_ready(value_head_forward(hidden_states, weight, bias))
    ref = (hidden_states @ weight)[..., 0] + bias[0, 0]
    assert value.shape == (B, S)
    assert jnp.allclose(value, ref, atol=2e-4, rtol=2e-4)

    # --- Test 2: ragged multi-row-tile path (no wrapper-side padding) --------
    B2, S2, H2 = 1, 2500, 32
    hs2 = jax.random.normal(k3, (B2, S2, H2), dtype=jnp.float32)
    w2, b2 = init_value_head_params(k4, H2)
    v2 = jax.block_until_ready(value_head_forward(hs2, w2, b2))
    ref2 = (hs2 @ w2)[..., 0] + b2[0, 0]
    assert v2.shape == (B2, S2)
    assert jnp.allclose(v2, ref2, atol=2e-4, rtol=2e-4)

    # --- Test 3: K-tiled (wide-hidden fallback) path, forced at small shape --
    B3, S3, H3 = 2, 8, 256
    hs3 = jax.random.normal(k1, (B3, S3, H3), dtype=jnp.float32)
    w3, b3 = init_value_head_params(k2, H3)
    v3 = jax.block_until_ready(
        value_head_forward(hs3, w3, b3, tile_m=16, tile_k=128))
    ref3 = (hs3 @ w3)[..., 0] + b3[0, 0]
    assert v3.shape == (B3, S3)
    assert jnp.allclose(v3, ref3, atol=2e-4, rtol=2e-4)

    print("KERNEL_OK")
</pallas_src>

<mosaic_0001>
module attributes {stable_mosaic.version = 11 : i64} {
  func.func @_value_head_kernel(%arg0: i32, %arg1: memref<16x32xf32, #tpu.memory_space<vmem>>, %arg2: memref<32x1xf32, #tpu.memory_space<vmem>>, %arg3: memref<1x1xf32, #tpu.memory_space<smem>>, %arg4: memref<1x16xf32, #tpu.memory_space<vmem>>) attributes {dimension_semantics = [#tpu.dimension_semantics<parallel>], iteration_bounds = array<i64: 1>, scalar_prefetch = 0 : i64, scratch_operands = 0 : i64, tpu.core_type = #tpu.core_type<tc>, window_params = [{transform_indices = @transform_0, window_bounds = array<i64: 16, 32>}, {pipeline_mode = #tpu.pipeline_mode<synchronous>, transform_indices = @transform_1, window_bounds = array<i64: 32, 1>}, {transform_indices = @transform_2, window_bounds = array<i64: 1, 1>}, {transform_indices = @transform_3, window_bounds = array<i64: 1, 16>}]} {
    %c0 = arith.constant 0 : index
    %c0_0 = arith.constant 0 : index
    %0 = memref.load %arg3[%c0, %c0_0] : memref<1x1xf32, #tpu.memory_space<smem>>
    %c0_1 = arith.constant 0 : index
    %c0_2 = arith.constant 0 : index
    %1 = vector.load %arg1[%c0_1, %c0_2] : memref<16x32xf32, #tpu.memory_space<vmem>>, vector<16x32xf32>
    %c0_3 = arith.constant 0 : index
    %c0_4 = arith.constant 0 : index
    %2 = vector.load %arg2[%c0_3, %c0_4] : memref<32x1xf32, #tpu.memory_space<vmem>>, vector<32x1xf32>
    %cst = arith.constant dense<0.000000e+00> : vector<16x1xf32>
    %3 = tpu.matmul %1, %2, %cst {dimension_numbers = #tpu.dot_dimension_numbers<[1], [0], [0], [1], [0, 0, 1, 1], [], []>} : vector<16x32xf32>, vector<32x1xf32>, vector<16x1xf32> -> vector<16x1xf32>
    %4 = vector.broadcast %0 : f32 to vector<16x1xf32>
    %5 = arith.addf %3, %4 : vector<16x1xf32>
    %6 = tpu.transpose %5, [1, 0] : vector<16x1xf32> -> vector<1x16xf32>
    %c0_5 = arith.constant 0 : index
    %c0_6 = arith.constant 0 : index
    %7 = vector.load %arg4[%c0_5, %c0_6] : memref<1x16xf32, #tpu.memory_space<vmem>>, vector<1x16xf32>
    tpu.vector_store %arg4[%c0_5, %c0_6], %6 {strides = array<i32>} : memref<1x16xf32, #tpu.memory_space<vmem>>, vector<1x16xf32>,
    return
  }
  func.func @transform_0(%arg0: i32) -> (i32, i32) {
    %c0_i32 = arith.constant 0 : i32
    %c0_i32_0 = arith.constant 0 : i32
    return %arg0, %c0_i32 : i32, i32
  }
  func.func @transform_1(%arg0: i32) -> (i32, i32) {
    %c0_i32 = arith.constant 0 : i32
    %c0_i32_0 = arith.constant 0 : i32
    %c0_i32_1 = arith.constant 0 : i32
    return %c0_i32, %c0_i32_0 : i32, i32
  }
  func.func @transform_2(%arg0: i32) -> (i32, i32) {
    %c0_i32 = arith.constant 0 : i32
    %c0_i32_0 = arith.constant 0 : i32
    %c0_i32_1 = arith.constant 0 : i32
    return %c0_i32, %c0_i32_0 : i32, i32
  }
  func.func @transform_3(%arg0: i32) -> (i32, i32) {
    %c0_i32 = arith.constant 0 : i32
    %c0_i32_0 = arith.constant 0 : i32
    return %c0_i32, %arg0 : i32, i32
  }
}

</mosaic_0001>

<bundles_post_ra>
// kernel: tpu_custom_call.1
= control target key start
LH: loop header
LB: loop body
LE: loop exit
PB: predicated region body
PF: predicated region fallthrough
CT: control target
= control target key end

     0   :  { %vm24_vm0 = vcmask 261120   ;;  %s261_s0 = inlined_call_operand.vmem [shape: f32[16,32], index: 0, kind: input, shape index: {}]   ;;  %s262_s1 = inlined_call_operand.vmem [shape: f32[32,1], index: 1, kind: input, shape index: {}]   ;;  %s263_s2 = inlined_call_operand.<no memory space> [shape: f32[1,1], index: 2, kind: input, shape index: {}]   ;;  %s264_s3 = inlined_call_operand.hbm [shape: f32[1,16], index: 3, kind: output, shape index: {}]  }
   0x1   :  { %v19_v0 = vld [vmem:[%s262_s1] sm:$0xff]  ;;  %v20_v1 = vld [vmem:[%s262_s1 + $0x8] sm:$0xff]  ;;  %v21_v2 = vld [vmem:[%s262_s1 + $0x10] sm:$0xff] }
   0x2   :  { %v173_v3 = vpack.c.bf16 %v20_v1, %v19_v0  ;;  %v22_v4 = vld [vmem:[%s262_s1 + $0x18] sm:$0xff]  ;;  %v17_v5 = vld [vmem:[%s261_s0] sm:$0xff] }
   0x3   :  { %v177_v6 = vpack.c.bf16 %v22_v4, %v21_v2  ;;  %170 = vmatprep.mubr.msk.f32.mxu0 %vm24_vm0, %v17_v5 }
   0x4   :  { %9 = vsyncpa [#allocation4], 0  ;;  %174 = vmatprep.subr.bf16.mxu0 %v173_v3  ;;  %v18_v7 = vld [vmem:[%s261_s0 + $0x8] sm:$0xff]  ;;  %v23_v8 = vstv %s263_s2  ;;  %s207_s1 = smov [#allocation3]   ;;  %vm138_vm1 = vcmask 122880  }
   0x5   :  { %176 = vmatpush3.bf16.msra.mxu0 %v173_v3  ;;  %s146_s26 = sshll.u32 %s207_s1, 4  ;;  %s147_s26 = int_to_ptr.vmem [resolvable:$true] %s146_s26 }
   0x6   :  { %178 = vmatprep.subr.bf16.mxu0 %v177_v6  ;;  %s183_s27 = scalar_lea.vmem %s147_s26, 16  ;;  %s187_s0 = scalar_lea.vmem %s147_s26, 32 }
   0x7   :  { %p184_p0 = scmp.ne.s32.totalorder %s147_s26, %s183_s27  ;;  %p188_p1 = scmp.lt.s32.totalorder %s147_s26, %s147_s26 }
   0x8   :  { %p189_p2 = scmp.lt.s32.totalorder %s187_s0, %s183_s27 }
   0x9   :  { %180 = vmatpush3.bf16.msra.mxu0 %v177_v6 }
   0xa   :  { %p190_p3 = por %p189_p2, %p188_p1 }
   0xc   :  { %171 = vmatmul.mubr.msk.f32.vlgmr.msra.gmra.mrb[0].mxu0 %vm24_vm0, %v18_v7  ;;  %p191_p4 = pnand %p190_p3, %p184_p0 }
  0xdf   :  { %v172_v9 = vpop.f32.mrb[0].mxu0 }
  0xe0   :  { %v97_v10 = vpop.f32.mrb[1].mxu0  ;;  %v103_v12 = vadd.f32 %v172_v9, %v23_v8 }
  0xe1   :  { %v98_v11 = vadd.f32 %v97_v10, %v23_v8 }
  0xe3   :  { %106 = vxpose.xlu0.b32.start [1/2] (short) (narrow) %v98_v11, 8 }
  0xe7   :  { %107 = vxpose.xlu0.b32.end [2/2] (short) (narrow) %v103_v12, 8 }
 0x163   :  { %v122_v13 = vpop.trf.xlu0 }
 0x164   :  { %139 = vst.msk [vmem:[#allocation3] sm:$0x1] %vm138_vm1, %v122_v13 }
 0x165   :  { %194 = shalt.err (!%p191_p4)
}
 0x166   :  { %s195_s29 = scalar_lea.hbm %s264_s3, 16 }
 0x167   :  { %p196_p5 = scmp.ne.s32.totalorder %s264_s3, %s195_s29  ;;  %p199_p6 = scmp.lt.u32.totalorder %s195_s29, %s264_s3 }
 0x169   :  { %p201_p7 = pnand %p199_p6, %p196_p5 }
 0x16b   :  { %204 = shalt.err (!%p201_p7)
}
 0x16c   :  { %149 = dma.vmem_to_hbm [thread:$0]  %s147_s26, 16, %s264_s3, [#allocation4]  }
 0x16d   :  { %205 = dma.done.wait [#allocation4], 16  }
 0x16e   :  { %206 = vsyncadd [#allocation4], 4294967280 }
 0x16f   :  { %153 = vsyncpa [#allocation4], 1 }

</bundles_post_ra>
